<compile_context>
chip_gen: v7x
topology: tpu7x:2x2x1
jax: 0.10.0
libtpu: 0.0.40
codegen_flags: <defaults>
</compile_context>

<pallas_src>
import math

import jax
import jax.numpy as jnp
import numpy as np
from jax import lax
from jax.experimental import pallas as pl
from jax.experimental.pallas import tpu as pltpu

NEG_INF = -1e30

_SINGLE_KV_MAX = 2048   # collapse the key axis entirely up to this many rows
_TQ_COLLAPSED = 256
_TQ_FLASH = 512


def _round_up(x, m):
    return (x + m - 1) // m * m


def _project(x2d, w_ref, b_ref):
    """(M, E) bf16 @ (E, E) bf16 -> f32 accumulation, plus f32 bias row."""
    return jnp.dot(x2d, w_ref[...], preferred_element_type=jnp.float32) + b_ref[...]


def _make_collapsed_kernel(tq, n_kv, e, masked):
    """Collapsed-key kernel: plain softmax over the full (resident) key axis."""

    def kernel(*refs):
        if masked:
            (xq_ref, xkv_ref, mask_ref, wq_ref, bq_ref, wk_ref, bk_ref,
             wv_ref, bv_ref, wf_ref, bf_ref, out_ref) = refs
        else:
            (xq_ref, xkv_ref, wq_ref, bq_ref, wk_ref, bk_ref,
             wv_ref, bv_ref, wf_ref, bf_ref, out_ref) = refs

        # Q projection for this query block (1/sqrt(E) folded into wq/bq).
        q = _project(xq_ref[...].reshape(2 * tq, e), wq_ref, bq_ref)
        q = q.reshape(2, tq, e).astype(jnp.bfloat16)

        # K/V projections over the full key axis (xkv block is grid-resident,
        # recomputed per query block so the "parallel" axis stays independent).
        xkv = xkv_ref[...].reshape(2 * n_kv, e)
        k = _project(xkv, wk_ref, bk_ref).reshape(2, n_kv, e).astype(jnp.bfloat16)
        v = _project(xkv, wv_ref, bv_ref).reshape(2, n_kv, e).astype(jnp.bfloat16)

        # Batched NT scores (no k.T materialized), bf16 MXU -> f32 accumulation.
        s = jnp.einsum('nqd,nkd->nqk', q, k,
                       preferred_element_type=jnp.float32)       # (2, tq, n_kv)
        if masked:
            s = s + mask_ref[...].reshape(1, 1, n_kv)            # additive pad mask

        # Plain (non-online) softmax -- no carries, no rescale.
        m = jnp.max(s, axis=-1, keepdims=True)
        p = jnp.exp(s - m)
        l = jnp.sum(p, axis=-1, keepdims=True)
        attn = jnp.einsum('nqk,nkd->nqd', p.astype(jnp.bfloat16), v,
                          preferred_element_type=jnp.float32)    # (2, tq, e)
        attn = attn * pl.reciprocal(l, approx=True)

        a_sum = attn[0] + attn[1]                                # (tq, e)
        # Folded out_proj + Linear(E,1): lane-dense (1, tq) result row.
        r = lax.dot_general(wf_ref[...], a_sum,
                            dimension_numbers=(((1,), (1,)), ((), ())),
                            preferred_element_type=jnp.float32)
        out_ref[...] = r + bf_ref[...]

    return kernel


def _make_flash_kernel(tq, tk, e, masked):
    """Online-softmax flash kernel over the (query_block, key_block) grid."""

    def kernel(*refs):
        if masked:
            (xq_ref, xkv_ref, mask_ref, wq_ref, bq_ref, wk_ref, bk_ref,
             wv_ref, bv_ref, wf_ref, bf_ref, out_ref,
             q_scr, m_scr, l_scr, acc_scr) = refs
        else:
            (xq_ref, xkv_ref, wq_ref, bq_ref, wk_ref, bk_ref,
             wv_ref, bv_ref, wf_ref, bf_ref, out_ref,
             q_scr, m_scr, l_scr, acc_scr) = refs

        kv = pl.program_id(1)

        @pl.when(kv == 0)
        def _init():
            q = _project(xq_ref[...].reshape(2 * tq, e), wq_ref, bq_ref)
            q_scr[...] = q.reshape(2, tq, e).astype(jnp.bfloat16)
            m_scr[...] = jnp.full(m_scr.shape, NEG_INF, jnp.float32)
            l_scr[...] = jnp.zeros(l_scr.shape, jnp.float32)
            acc_scr[...] = jnp.zeros(acc_scr.shape, jnp.float32)

        xkv = xkv_ref[...].reshape(2 * tk, e)
        k = _project(xkv, wk_ref, bk_ref).reshape(2, tk, e).astype(jnp.bfloat16)
        v = _project(xkv, wv_ref, bv_ref).reshape(2, tk, e).astype(jnp.bfloat16)

        s = jnp.einsum('nqd,nkd->nqk', q_scr[...], k,
                       preferred_element_type=jnp.float32)        # (2, tq, tk)
        if masked:
            s = s + mask_ref[...].reshape(1, 1, tk)

        # Online softmax update.
        m_prev = m_scr[...]
        m_new = jnp.maximum(m_prev, jnp.max(s, axis=-1, keepdims=True))
        alpha = jnp.exp(m_prev - m_new)
        p = jnp.exp(s - m_new)
        l_scr[...] = alpha * l_scr[...] + jnp.sum(p, axis=-1, keepdims=True)
        acc_scr[...] = alpha * acc_scr[...] + jnp.einsum(
            'nqk,nkd->nqd', p.astype(jnp.bfloat16), v,
            preferred_element_type=jnp.float32)
        m_scr[...] = m_new

        @pl.when(kv == pl.num_programs(1) - 1)
        def _finalize():
            attn = acc_scr[...] * pl.reciprocal(l_scr[...], approx=True)
            a_sum = attn[0] + attn[1]
            r = lax.dot_general(wf_ref[...], a_sum,
                                dimension_numbers=(((1,), (1,)), ((), ())),
                                preferred_element_type=jnp.float32)
            out_ref[...] = r + bf_ref[...]

    return kernel


def attention_cf_forward(params, user_ids, item_ids):
    """Embedding gather + weight folding in XLA; attention hot path in Pallas."""
    u = params["user_emb"][user_ids]        # (B, E)
    it = params["item_emb"][item_ids]       # (B, E)
    B, E = u.shape
    scale = 1.0 / math.sqrt(E)

    wq = params["in_proj_weight"][:E]
    wk = params["in_proj_weight"][E:2 * E]
    wv = params["in_proj_weight"][2 * E:]
    bq = params["in_proj_bias"][:E]
    bk = params["in_proj_bias"][E:2 * E]
    bv = params["in_proj_bias"][2 * E:]
    wo = params["out_proj_weight"]          # (E, E)
    bo = params["out_proj_bias"]            # (E,)
    wout = params["output_weight"]          # (1, E)
    bout = params["output_bias"]            # (1,)

    # Wrapper-side (free) layout plumbing:
    #  - pre-transpose weights for x @ W; cast MXU operands to bf16
    #  - fold the 1/sqrt(E) score scale into the Q projection
    #  - fold out_proj + final Linear(E,1) into a single (1,E) vector + scalar bias
    wq_t = (wq.T * scale).astype(jnp.bfloat16)
    bq_s = (bq * scale).reshape(1, E).astype(jnp.float32)
    wk_t = wk.T.astype(jnp.bfloat16)
    bk_s = bk.reshape(1, E).astype(jnp.float32)
    wv_t = wv.T.astype(jnp.bfloat16)
    bv_s = bv.reshape(1, E).astype(jnp.float32)
    w_fold = (wout @ wo).astype(jnp.float32)                     # (1, E)
    b_fold = (2.0 * (wout @ bo) + bout).reshape(1, 1).astype(jnp.float32)

    # Streams stacked on a leading axis; streamed to the kernel in bf16.
    x = jnp.stack([u, it], axis=0).astype(jnp.bfloat16)          # (2, B, E)

    # Tile policy (per perf review):
    #  * B <= 256: one query block, one key block.
    #  * B <= 2048: collapsed key axis (plain softmax), tq=256; b_pad a multiple
    #    of 2*tq so the query-block count is even (v7x two-TC sharding).
    #  * larger B: flash/online-softmax path, tq=tk=512, even #query blocks.
    if B <= 256:
        tq = _round_up(B, 8)
        b_pad = tq
        flash = False
    elif B <= _SINGLE_KV_MAX:
        tq = _TQ_COLLAPSED
        b_pad = _round_up(B, 2 * tq)
        flash = False
    else:
        tq = _TQ_FLASH
        b_pad = _round_up(B, 2 * tq)
        flash = True

    if b_pad != B:
        x = jnp.pad(x, ((0, 0), (0, b_pad - B), (0, 0)))
    masked = b_pad > B
    if masked:
        mask = jnp.where(jnp.arange(b_pad) < B, 0.0, NEG_INF)
        mask = mask.reshape(1, b_pad).astype(jnp.float32)

    n_q = b_pad // tq
    weights = [wq_t, bq_s, wk_t, bk_s, wv_t, bv_s, w_fold, b_fold]
    weight_shapes = [(E, E), (1, E), (E, E), (1, E), (E, E), (1, E), (1, E), (1, 1)]

    vmem_limit = 40 * 1024 * 1024   # > v5e 16MiB scoped default, < v7x 64MiB physical

    if not flash:
        kernel = _make_collapsed_kernel(tq, b_pad, E, masked)
        in_specs = [
            pl.BlockSpec((2, tq, E), lambda q: (0, q, 0)),       # query rows
            pl.BlockSpec((2, b_pad, E), lambda q: (0, 0, 0)),    # full keys (resident)
        ]
        args = [x, x]
        if masked:
            in_specs.append(pl.BlockSpec((1, b_pad), lambda q: (0, 0)))
            args.append(mask)
        in_specs += [pl.BlockSpec(shp, lambda q: (0, 0)) for shp in weight_shapes]
        args += weights

        cost = pl.CostEstimate(
            flops=int(4 * b_pad * E * E + n_q * 8 * b_pad * E * E
                      + 8 * b_pad * b_pad * E),
            transcendentals=int(2 * b_pad * b_pad),
            bytes_accessed=int(2 * (2 * b_pad * E * 2) + 4 * b_pad + 2 * 5 * E * E),
        )
        out = pl.pallas_call(
            kernel,
            out_shape=jax.ShapeDtypeStruct((1, b_pad), jnp.float32),
            grid=(n_q,),
            in_specs=in_specs,
            out_specs=pl.BlockSpec((1, tq), lambda q: (0, q)),   # lane-dense ratings
            compiler_params=pltpu.CompilerParams(
                dimension_semantics=("parallel",),
                vmem_limit_bytes=vmem_limit),
            cost_estimate=cost,
        )(*args)
    else:
        tk = tq
        n_k = b_pad // tk
        kernel = _make_flash_kernel(tq, tk, E, masked)
        in_specs = [
            pl.BlockSpec((2, tq, E), lambda q, k: (0, q, 0)),    # query rows
            pl.BlockSpec((2, tk, E), lambda q, k: (0, k, 0)),    # key/value rows
        ]
        args = [x, x]
        if masked:
            in_specs.append(pl.BlockSpec((1, tk), lambda q, k: (0, k)))
            args.append(mask)
        in_specs += [pl.BlockSpec(shp, lambda q, k: (0, 0)) for shp in weight_shapes]
        args += weights

        cost = pl.CostEstimate(
            flops=int(4 * b_pad * E * E + n_q * 8 * b_pad * E * E
                      + 8 * b_pad * b_pad * E),
            transcendentals=int(2 * b_pad * b_pad),
            # key/value rows (bf16) are re-streamed once per query block
            bytes_accessed=int(2 * b_pad * E * 2 + n_q * 2 * b_pad * E * 2
                               + 4 * b_pad + 2 * 5 * E * E),
        )
        out = pl.pallas_call(
            kernel,
            out_shape=jax.ShapeDtypeStruct((1, b_pad), jnp.float32),
            grid=(n_q, n_k),
            in_specs=in_specs,
            out_specs=pl.BlockSpec((1, tq), lambda q, k: (0, q)),
            scratch_shapes=[
                pltpu.VMEM((2, tq, E), jnp.bfloat16),   # cached Q projection
                pltpu.VMEM((2, tq, 1), jnp.float32),    # running row max
                pltpu.VMEM((2, tq, 1), jnp.float32),    # running denominator
                pltpu.VMEM((2, tq, E), jnp.float32),    # running numerator
            ],
            compiler_params=pltpu.CompilerParams(
                dimension_semantics=("parallel", "arbitrary"),
                vmem_limit_bytes=vmem_limit),
            cost_estimate=cost,
        )(*args)

    return out[0, :B]


def reference_forward(params, user_ids, item_ids):
    """Pure-JAX f32 reference matching the PyTorch module (eval mode)."""
    u = params["user_emb"][user_ids]
    it = params["item_emb"][item_ids]
    E = u.shape[-1]
    wq = params["in_proj_weight"][:E]
    wk = params["in_proj_weight"][E:2 * E]
    wv = params["in_proj_weight"][2 * E:]
    bq = params["in_proj_bias"][:E]
    bk = params["in_proj_bias"][E:2 * E]
    bv = params["in_proj_bias"][2 * E:]

    def attend(x):
        q = x @ wq.T + bq
        k = x @ wk.T + bk
        v = x @ wv.T + bv
        s = (q @ k.T) / math.sqrt(E)
        p = jax.nn.softmax(s, axis=-1)
        a = p @ v
        return a @ params["out_proj_weight"].T + params["out_proj_bias"]

    attn_sum = attend(u) + attend(it)
    return (attn_sum @ params["output_weight"].T + params["output_bias"])[:, 0]


def init_params(key, num_users, num_items, embedding_dim):
    ks = jax.random.split(key, 8)
    E = embedding_dim
    lim = 1.0 / math.sqrt(E)
    return {
        "user_emb": jax.random.normal(ks[0], (num_users, E), jnp.float32),
        "item_emb": jax.random.normal(ks[1], (num_items, E), jnp.float32),
        "in_proj_weight": jax.random.uniform(ks[2], (3 * E, E), jnp.float32, -lim, lim),
        "in_proj_bias": jax.random.uniform(ks[3], (3 * E,), jnp.float32, -lim, lim),
        "out_proj_weight": jax.random.uniform(ks[4], (E, E), jnp.float32, -lim, lim),
        "out_proj_bias": jnp.zeros((E,), jnp.float32),
        "output_weight": jax.random.uniform(ks[5], (1, E), jnp.float32, -lim, lim),
        "output_bias": jax.random.uniform(ks[6], (1,), jnp.float32, -lim, lim),
    }


if __name__ == "__main__":
    num_users, num_items, embedding_dim = 50, 40, 32

    key = jax.random.PRNGKey(0)
    pkey, *ikeys = jax.random.split(key, 7)
    params = init_params(pkey, num_users, num_items, embedding_dim)

    forward = jax.jit(attention_cf_forward)

    def check(B, ku, ki):
        user_ids = jax.random.randint(ku, (B,), 0, num_users)
        item_ids = jax.random.randint(ki, (B,), 0, num_items)
        got = jax.block_until_ready(forward(params, user_ids, item_ids))
        want = jax.block_until_ready(reference_forward(params, user_ids, item_ids))
        assert got.shape == (B,)
        # bf16 streaming of the embeddings -> ~0.5% relative error vs f32 reference.
        np.testing.assert_allclose(np.asarray(got), np.asarray(want),
                                   rtol=2e-2, atol=2e-2)

    check(8, ikeys[0], ikeys[1])      # tiny single-block path
    check(600, ikeys[2], ikeys[3])    # collapsed-key path, 4 query blocks, padded keys
    check(2500, ikeys[4], ikeys[5])   # flash/online-softmax path (B > 2048), padded

    print("KERNEL_OK")
</pallas_src>

<mosaic_0001>
module attributes {stable_mosaic.version = 11 : i64} {
  func.func @kernel(%arg0: i32, %arg1: memref<2x8x32xbf16, #tpu.memory_space<vmem>>, %arg2: memref<2x8x32xbf16, #tpu.memory_space<vmem>>, %arg3: memref<32x32xbf16, #tpu.memory_space<vmem>>, %arg4: memref<1x32xf32, #tpu.memory_space<vmem>>, %arg5: memref<32x32xbf16, #tpu.memory_space<vmem>>, %arg6: memref<1x32xf32, #tpu.memory_space<vmem>>, %arg7: memref<32x32xbf16, #tpu.memory_space<vmem>>, %arg8: memref<1x32xf32, #tpu.memory_space<vmem>>, %arg9: memref<1x32xf32, #tpu.memory_space<vmem>>, %arg10: memref<1x1xf32, #tpu.memory_space<vmem>>, %arg11: memref<1x8xf32, #tpu.memory_space<vmem>>) attributes {dimension_semantics = [#tpu.dimension_semantics<parallel>], iteration_bounds = array<i64: 1>, scalar_prefetch = 0 : i64, scratch_operands = 0 : i64, tpu.core_type = #tpu.core_type<tc>, window_params = [{transform_indices = @transform_0, window_bounds = array<i64: 2, 8, 32>}, {pipeline_mode = #tpu.pipeline_mode<synchronous>, transform_indices = @transform_1, window_bounds = array<i64: 2, 8, 32>}, {pipeline_mode = #tpu.pipeline_mode<synchronous>, transform_indices = @transform_2, window_bounds = array<i64: 32, 32>}, {pipeline_mode = #tpu.pipeline_mode<synchronous>, transform_indices = @transform_3, window_bounds = array<i64: 1, 32>}, {pipeline_mode = #tpu.pipeline_mode<synchronous>, transform_indices = @transform_4, window_bounds = array<i64: 32, 32>}, {pipeline_mode = #tpu.pipeline_mode<synchronous>, transform_indices = @transform_5, window_bounds = array<i64: 1, 32>}, {pipeline_mode = #tpu.pipeline_mode<synchronous>, transform_indices = @transform_6, window_bounds = array<i64: 32, 32>}, {pipeline_mode = #tpu.pipeline_mode<synchronous>, transform_indices = @transform_7, window_bounds = array<i64: 1, 32>}, {pipeline_mode = #tpu.pipeline_mode<synchronous>, transform_indices = @transform_8, window_bounds = array<i64: 1, 32>}, {pipeline_mode = #tpu.pipeline_mode<synchronous>, transform_indices = @transform_9, window_bounds = array<i64: 1, 1>}, {transform_indices = @transform_10, window_bounds = array<i64: 1, 8>}]} {
    %c0 = arith.constant 0 : index
    %c0_0 = arith.constant 0 : index
    %c0_1 = arith.constant 0 : index
    %0 = vector.load %arg1[%c0, %c0_0, %c0_1] : memref<2x8x32xbf16, #tpu.memory_space<vmem>>, vector<2x8x32xbf16>
    %1 = vector.shape_cast %0 : vector<2x8x32xbf16> to vector<16x32xbf16>
    %c0_2 = arith.constant 0 : index
    %c0_3 = arith.constant 0 : index
    %2 = vector.load %arg3[%c0_2, %c0_3] : memref<32x32xbf16, #tpu.memory_space<vmem>>, vector<32x32xbf16>
    %cst = arith.constant dense<0.000000e+00> : vector<16x32xf32>
    %3 = tpu.matmul %1, %2, %cst {dimension_numbers = #tpu.dot_dimension_numbers<[1], [0], [0], [1], [0, 0, 1, 1], [], []>} : vector<16x32xbf16>, vector<32x32xbf16>, vector<16x32xf32> -> vector<16x32xf32>
    %c0_4 = arith.constant 0 : index
    %c0_5 = arith.constant 0 : index
    %4 = vector.load %arg4[%c0_4, %c0_5] : memref<1x32xf32, #tpu.memory_space<vmem>>, vector<1x32xf32>
    %5 = vector.broadcast %4 : vector<1x32xf32> to vector<16x32xf32>
    %6 = arith.addf %3, %5 : vector<16x32xf32>
    %7 = vector.shape_cast %6 : vector<16x32xf32> to vector<2x8x32xf32>
    %8 = arith.truncf %7 : vector<2x8x32xf32> to vector<2x8x32xbf16>
    %c0_6 = arith.constant 0 : index
    %c0_7 = arith.constant 0 : index
    %c0_8 = arith.constant 0 : index
    %9 = vector.load %arg2[%c0_6, %c0_7, %c0_8] : memref<2x8x32xbf16, #tpu.memory_space<vmem>>, vector<2x8x32xbf16>
    %10 = vector.shape_cast %9 : vector<2x8x32xbf16> to vector<16x32xbf16>
    %c0_9 = arith.constant 0 : index
    %c0_10 = arith.constant 0 : index
    %11 = vector.load %arg5[%c0_9, %c0_10] : memref<32x32xbf16, #tpu.memory_space<vmem>>, vector<32x32xbf16>
    %cst_11 = arith.constant dense<0.000000e+00> : vector<16x32xf32>
    %12 = tpu.matmul %10, %11, %cst_11 {dimension_numbers = #tpu.dot_dimension_numbers<[1], [0], [0], [1], [0, 0, 1, 1], [], []>} : vector<16x32xbf16>, vector<32x32xbf16>, vector<16x32xf32> -> vector<16x32xf32>
    %c0_12 = arith.constant 0 : index
    %c0_13 = arith.constant 0 : index
    %13 = vector.load %arg6[%c0_12, %c0_13] : memref<1x32xf32, #tpu.memory_space<vmem>>, vector<1x32xf32>
    %14 = vector.broadcast %13 : vector<1x32xf32> to vector<16x32xf32>
    %15 = arith.addf %12, %14 : vector<16x32xf32>
    %16 = vector.shape_cast %15 : vector<16x32xf32> to vector<2x8x32xf32>
    %17 = arith.truncf %16 : vector<2x8x32xf32> to vector<2x8x32xbf16>
    %c0_14 = arith.constant 0 : index
    %c0_15 = arith.constant 0 : index
    %18 = vector.load %arg7[%c0_14, %c0_15] : memref<32x32xbf16, #tpu.memory_space<vmem>>, vector<32x32xbf16>
    %cst_16 = arith.constant dense<0.000000e+00> : vector<16x32xf32>
    %19 = tpu.matmul %10, %18, %cst_16 {dimension_numbers = #tpu.dot_dimension_numbers<[1], [0], [0], [1], [0, 0, 1, 1], [], []>} : vector<16x32xbf16>, vector<32x32xbf16>, vector<16x32xf32> -> vector<16x32xf32>
    %c0_17 = arith.constant 0 : index
    %c0_18 = arith.constant 0 : index
    %20 = vector.load %arg8[%c0_17, %c0_18] : memref<1x32xf32, #tpu.memory_space<vmem>>, vector<1x32xf32>
    %21 = vector.broadcast %20 : vector<1x32xf32> to vector<16x32xf32>
    %22 = arith.addf %19, %21 : vector<16x32xf32>
    %23 = vector.shape_cast %22 : vector<16x32xf32> to vector<2x8x32xf32>
    %24 = arith.truncf %23 : vector<2x8x32xf32> to vector<2x8x32xbf16>
    "tpu.trace_start"() <{level = 10 : i32, message = "nqd,nkd->nqk"}> : () -> ()
    %cst_19 = arith.constant dense<0.000000e+00> : vector<2x8x8xf32>
    %25 = tpu.matmul %8, %17, %cst_19 {dimension_numbers = #tpu.dot_dimension_numbers<[2], [2], [1], [1], [0, 0, 0, 1, 1, 1], [0], [0]>} : vector<2x8x32xbf16>, vector<2x8x32xbf16>, vector<2x8x8xf32> -> vector<2x8x8xf32>
    "tpu.trace_stop"() : () -> ()
    %cst_20 = arith.constant dense<0xFF800000> : vector<2x8xf32>
    %26 = vector.multi_reduction <maximumf>, %25, %cst_20 [2] : vector<2x8x8xf32> to vector<2x8xf32>
    %27 = vector.shape_cast %26 : vector<2x8xf32> to vector<2x8x1xf32>
    %28 = vector.broadcast %27 : vector<2x8x1xf32> to vector<2x8x8xf32>
    %29 = arith.subf %25, %28 : vector<2x8x8xf32>
    %30 = math.exp %29 : vector<2x8x8xf32>
    %cst_21 = arith.constant dense<0.000000e+00> : vector<2x8xf32>
    %31 = vector.multi_reduction <add>, %30, %cst_21 [2] : vector<2x8x8xf32> to vector<2x8xf32>
    %32 = vector.shape_cast %31 : vector<2x8xf32> to vector<2x8x1xf32>
    %33 = arith.truncf %30 : vector<2x8x8xf32> to vector<2x8x8xbf16>
    "tpu.trace_start"() <{level = 10 : i32, message = "nqk,nkd->nqd"}> : () -> ()
    %cst_22 = arith.constant dense<0.000000e+00> : vector<2x8x32xf32>
    %34 = tpu.matmul %33, %24, %cst_22 {dimension_numbers = #tpu.dot_dimension_numbers<[2], [1], [1], [2], [0, 0, 0, 1, 1, 2], [0], [0]>} : vector<2x8x8xbf16>, vector<2x8x32xbf16>, vector<2x8x32xf32> -> vector<2x8x32xf32>
    "tpu.trace_stop"() : () -> ()
    %35 = tpu.reciprocal %32 {approx = true} : vector<2x8x1xf32> -> vector<2x8x1xf32>
    %36 = vector.broadcast %35 : vector<2x8x1xf32> to vector<2x8x32xf32>
    %37 = arith.mulf %34, %36 : vector<2x8x32xf32>
    %38 = vector.extract_strided_slice %37 {offsets = [0, 0, 0], sizes = [1, 8, 32], strides = [1, 1, 1]} : vector<2x8x32xf32> to vector<1x8x32xf32>
    %39 = vector.shape_cast %38 : vector<1x8x32xf32> to vector<8x32xf32>
    %40 = vector.extract_strided_slice %37 {offsets = [1, 0, 0], sizes = [1, 8, 32], strides = [1, 1, 1]} : vector<2x8x32xf32> to vector<1x8x32xf32>
    %41 = vector.shape_cast %40 : vector<1x8x32xf32> to vector<8x32xf32>
    %42 = arith.addf %39, %41 : vector<8x32xf32>
    %c0_23 = arith.constant 0 : index
    %c0_24 = arith.constant 0 : index
    %43 = vector.load %arg9[%c0_23, %c0_24] : memref<1x32xf32, #tpu.memory_space<vmem>>, vector<1x32xf32>
    %cst_25 = arith.constant dense<0.000000e+00> : vector<1x8xf32>
    %44 = tpu.matmul %43, %42, %cst_25 {dimension_numbers = #tpu.dot_dimension_numbers<[1], [1], [0], [0], [0, 0, 1, 0], [], []>} : vector<1x32xf32>, vector<8x32xf32>, vector<1x8xf32> -> vector<1x8xf32>
    %c0_26 = arith.constant 0 : index
    %c0_27 = arith.constant 0 : index
    %45 = vector.load %arg10[%c0_26, %c0_27] : memref<1x1xf32, #tpu.memory_space<vmem>>, vector<1x1xf32>
    %46 = vector.broadcast %45 : vector<1x1xf32> to vector<1x8xf32>
    %47 = arith.addf %44, %46 : vector<1x8xf32>
    %c0_28 = arith.constant 0 : index
    %c0_29 = arith.constant 0 : index
    %48 = vector.load %arg11[%c0_28, %c0_29] : memref<1x8xf32, #tpu.memory_space<vmem>>, vector<1x8xf32>
    tpu.vector_store %arg11[%c0_28, %c0_29], %47 {strides = array<i32>} : memref<1x8xf32, #tpu.memory_space<vmem>>, vector<1x8xf32>,
    return
  }
  func.func @transform_0(%arg0: i32) -> (i32, i32, i32) {
    %c0_i32 = arith.constant 0 : i32
    %c0_i32_0 = arith.constant 0 : i32
    %c0_i32_1 = arith.constant 0 : i32
    return %c0_i32, %arg0, %c0_i32_0 : i32, i32, i32
  }
  func.func @transform_1(%arg0: i32) -> (i32, i32, i32) {
    %c0_i32 = arith.constant 0 : i32
    %c0_i32_0 = arith.constant 0 : i32
    %c0_i32_1 = arith.constant 0 : i32
    %c0_i32_2 = arith.constant 0 : i32
    return %c0_i32, %c0_i32_0, %c0_i32_1 : i32, i32, i32
  }
  func.func @transform_2(%arg0: i32) -> (i32, i32) {
    %c0_i32 = arith.constant 0 : i32
    %c0_i32_0 = arith.constant 0 : i32
    %c0_i32_1 = arith.constant 0 : i32
    return %c0_i32, %c0_i32_0 : i32, i32
  }
  func.func @transform_3(%arg0: i32) -> (i32, i32) {
    %c0_i32 = arith.constant 0 : i32
    %c0_i32_0 = arith.constant 0 : i32
    %c0_i32_1 = arith.constant 0 : i32
    return %c0_i32, %c0_i32_0 : i32, i32
  }
  func.func @transform_4(%arg0: i32) -> (i32, i32) {
    %c0_i32 = arith.constant 0 : i32
    %c0_i32_0 = arith.constant 0 : i32
    %c0_i32_1 = arith.constant 0 : i32
    return %c0_i32, %c0_i32_0 : i32, i32
  }
  func.func @transform_5(%arg0: i32) -> (i32, i32) {
    %c0_i32 = arith.constant 0 : i32
    %c0_i32_0 = arith.constant 0 : i32
    %c0_i32_1 = arith.constant 0 : i32
    return %c0_i32, %c0_i32_0 : i32, i32
  }
  func.func @transform_6(%arg0: i32) -> (i32, i32) {
    %c0_i32 = arith.constant 0 : i32
    %c0_i32_0 = arith.constant 0 : i32
    %c0_i32_1 = arith.constant 0 : i32
    return %c0_i32, %c0_i32_0 : i32, i32
  }
  func.func @transform_7(%arg0: i32) -> (i32, i32) {
    %c0_i32 = arith.constant 0 : i32
    %c0_i32_0 = arith.constant 0 : i32
    %c0_i32_1 = arith.constant 0 : i32
    return %c0_i32, %c0_i32_0 : i32, i32
  }
  func.func @transform_8(%arg0: i32) -> (i32, i32) {
    %c0_i32 = arith.constant 0 : i32
    %c0_i32_0 = arith.constant 0 : i32
    %c0_i32_1 = arith.constant 0 : i32
    return %c0_i32, %c0_i32_0 : i32, i32
  }
  func.func @transform_9(%arg0: i32) -> (i32, i32) {
    %c0_i32 = arith.constant 0 : i32
    %c0_i32_0 = arith.constant 0 : i32
    %c0_i32_1 = arith.constant 0 : i32
    return %c0_i32, %c0_i32_0 : i32, i32
  }
  func.func @transform_10(%arg0: i32) -> (i32, i32) {
    %c0_i32 = arith.constant 0 : i32
    %c0_i32_0 = arith.constant 0 : i32
    return %c0_i32, %arg0 : i32, i32
  }
}

</mosaic_0001>

<bundles_post_ra>
// kernel: attention_cf_forward.1
= control target key start
LH: loop header
LB: loop body
LE: loop exit
PB: predicated region body
PF: predicated region fallthrough
CT: control target
= control target key end

     0   :  { %s861_s0 = inlined_call_operand.vmem [shape: bf16[2,8,32], index: 0, kind: input, shape index: {}, may-alias: {0,1}]   ;;  %s862_s1 = inlined_call_operand.vmem [shape: bf16[2,8,32], index: 1, kind: input, shape index: {}, may-alias: {0,1}]   ;;  %s863_s2 = inlined_call_operand.vmem [shape: bf16[32,32], index: 2, kind: input, shape index: {}]   ;;  %s864_s3 = inlined_call_operand.vmem [shape: f32[1,32], index: 3, kind: input, shape index: {}]   ;;  %s865_s4 = inlined_call_operand.vmem [shape: bf16[32,32], index: 4, kind: input, shape index: {}]   ;;  %s866_s5 = inlined_call_operand.vmem [shape: f32[1,32], index: 5, kind: input, shape index: {}]   ;;  %s867_s6 = inlined_call_operand.vmem [shape: bf16[32,32], index: 6, kind: input, shape index: {}]   ;;  %s868_s7 = inlined_call_operand.vmem [shape: f32[1,32], index: 7, kind: input, shape index: {}]   ;;  %s869_s8 = inlined_call_operand.vmem [shape: f32[1,32], index: 8, kind: input, shape index: {}]   ;;  %s870_s9 = inlined_call_operand.<no memory space> [shape: f32[1,1], index: 9, kind: input, shape index: {}]   ;;  %s871_s10 = inlined_call_operand.hbm [shape: f32[1,8], index: 10, kind: output, shape index: {}]  }
   0x1   :  { %v15_v0 = vstv %s870_s9 }
   0x2   :  { %16 = vst [vmem:[#allocation2] sm:$0x1] %v15_v0 }
   0x3   :  { %v669_v1 = vld [vmem:[%s865_s4] sm:$0xff]   ;;  %v709_v2 = vmov 0.0   ;;  %v670_v3 = vld [vmem:[%s865_s4 + $0x8] sm:$0xff]   ;;  %vm710_vm0 = vmmov 0   ;;  %vm69_vm1 = vcmask 261120  }
   0x4   :  { %619 = vmatprep.subr.bf16.mxu1 %v709_v2  ;;  %611 = vmatprep.subr.bf16.mxu0 %v709_v2  ;;  %v671_v4 = vld [vmem:[%s863_s2] sm:$0xff]   ;;  %v673_v5 = vld [vmem:[%s863_s2 + $0x8] sm:$0xff]  }
   0x5   :  { %620 = vmatpush3.bf16.msra.mxu1 %v669_v1  ;;  %623 = vmatprep.mubr.msk.bf16.mxu1 %vm710_vm0, %v709_v2  ;;  %v672_v6 = vld [vmem:[%s862_s1] sm:$0xff]  }
   0x6   :  { %621 = vmatprep.subr.bf16.mxu1 %v709_v2  ;;  %615 = vmatprep.mubr.msk.bf16.mxu0 %vm710_vm0, %v709_v2  ;;  %v674_v7 = vld [vmem:[%s861_s0] sm:$0xff]  }
   0x7   :  { %612 = vmatpush3.bf16.msra.mxu0 %v671_v4  ;;  %v675_v8 = vld [vmem:[%s867_s6] sm:$0xff]  }
   0x8   :  { %613 = vmatprep.subr.bf16.mxu0 %v709_v2 }
   0x9   :  { %622 = vmatpush3.bf16.msra.mxu1 %v670_v3 }
   0xa   :  { %635 = vmatprep.subr.bf16.mxu1 %v709_v2 }
   0xb   :  { %614 = vmatpush3.bf16.msra.mxu0 %v673_v5 }
   0xc   :  { %17 = vsyncpa [#allocation4], 0  ;;  %624 = vmatmul.mubr.msk.bf16.vlgmr.msra.gmra.mrb[0].mxu1 %vm69_vm1, %v672_v6  ;;  %627 = vmatprep.subr.bf16.mxu0 %v709_v2  ;;  %v676_v9 = vld [vmem:[%s867_s6 + $0x8] sm:$0xff]   ;;  %v577_v10 = vld [vmem:[%s866_s5] ss:$0 sm:$0xff]  ;;  %vm374_vm2 = vcmask 1043456  }
   0xd   :  { %637 = vmatprep.mubr.msk.bf16.mxu1 %vm710_vm0, %v709_v2  ;;  %v572_v15 = vld [vmem:[%s864_s3] ss:$0 sm:$0xff]  ;;  %vm350_vm3 = vcmask 64512   ;;  %v711_v0 = vmov 0   ;;  %s712_s30 = smov [#allocation3]   ;;  %vm556_vm4 = vcmask 57344  }
   0xe   :  { %616 = vmatmul.mubr.msk.bf16.vlgmr.msra.gmra.mrb[0].mxu0 %vm69_vm1, %v674_v7  ;;  %v582_v27 = vld [vmem:[%s868_s7] ss:$0 sm:$0xff]  ;;  %668 = vset.pattern.permute.xlu0 %v711_v0  ;;  %s564_s11 = sshll.u32 %s712_s30, 4  ;;  %s565_s11 = int_to_ptr.vmem [resolvable:$true] %s564_s11 }
   0xf   :  { %628 = vmatpush3.bf16.msra.mxu0 %v675_v8  ;;  %631 = vmatprep.mubr.msk.bf16.mxu0 %vm710_vm0, %v709_v2  ;;  %v470_v63 = vld [vmem:[#allocation2] sm:$0x1]  ;;  %s685_s12 = scalar_lea.vmem %s565_s11, 16  ;;  %s689_s13 = scalar_lea.vmem %s565_s11, 32 }
  0x10   :  { %629 = vmatprep.subr.bf16.mxu0 %v709_v2  ;;  %p686_p0 = scmp.ne.s32.totalorder %s565_s11, %s685_s12  ;;  %p690_p1 = scmp.lt.s32.totalorder %s565_s11, %s565_s11 }
  0x11   :  { %p691_p2 = scmp.lt.s32.totalorder %s689_s13, %s685_s12 }
  0x13   :  { %630 = vmatpush3.bf16.msra.mxu0 %v676_v9  ;;  %p692_p3 = por %p691_p2, %p690_p1 }
  0x14   :  { %641 = vmatprep.subr.bf16.mxu0 %v709_v2 }
  0x15   :  { %p693_p4 = pnand %p692_p3, %p686_p0 }
  0x16   :  { %632 = vmatmul.mubr.msk.bf16.vlgmr.msra.gmra.mrb[4].mxu0 %vm69_vm1, %v672_v6 }
  0x17   :  { %643 = vmatprep.mubr.msk.bf16.mxu0 %vm710_vm0, %v709_v2 }
  0xdf   :  { %v183_v11 = vpop.f32.mrb[0].mxu1 }
  0xe0   :  { %v184_v12 = vadd.f32 %v577_v10, %v183_v11  ;;  %v625_v13 = vpop.f32.mrb[1].mxu1 }
  0xe1   :  { %v186_v14 = vpop.f32.mrb[2].mxu1  ;;  %v107_v16 = vpop.f32.mrb[0].mxu0 }
  0xe2   :  { %v190_v17 = vpack.c.bf16 %v184_v12, %v184_v12  ;;  %v187_v18 = vadd.f32 %v577_v10, %v186_v14  ;;  %v626_v19 = vpop.f32.mrb[3].mxu1  ;;  %v617_v20 = vpop.f32.mrb[1].mxu0  ;;  %v108_v24 = vadd.f32 %v572_v15, %v107_v16  ;;  %v469_v16 = vld [vmem:[%s869_s8] sm:$0x1] }
  0xe3   :  { %v110_v21 = vpop.f32.mrb[2].mxu0 }
  0xe4   :  { %v262_v22 = vsel %vm69_vm1, %v190_v17, 0  ;;  %v191_v23 = vpack.c.bf16 %v187_v18, %v187_v18  ;;  %v618_v25 = vpop.f32.mrb[3].mxu0  ;;  %v114_v28 = vpack.c.bf16 %v108_v24, %v108_v24  ;;  %v111_v29 = vadd.f32 %v572_v15, %v110_v21 }
  0xe5   :  { %636 = vmatpush3.bf16.xpose.msra.mxu1 %v262_v22  ;;  %v476_v17 = vlaneseq }
  0xe6   :  { %v308_v26 = vsel %vm69_vm1, %v191_v23, 0  ;;  %647 = vmatprep.subr.bf16.mxu1 %v709_v2  ;;  %v115_v34 = vpack.c.bf16 %v111_v29, %v111_v29 }
  0xe7   :  { %642 = vmatpush3.bf16.xpose.msra.mxu0 %v308_v26  ;;  %v477_v18 = vshrl.u32 %v476_v17, 7 }
  0xe8   :  { %653 = vmatprep.subr.bf16.mxu0 %v709_v2 }
  0xe9   :  { %v249_v30 = vpop.f32.mrb[4].mxu0  ;;  %v478_v19 = vsub.s32 0, %v477_v18 }
  0xea   :  { %v250_v31 = vadd.f32 %v582_v27, %v249_v30  ;;  %v633_v32 = vpop.f32.mrb[5].mxu0 }
  0xeb   :  { %v252_v33 = vpop.f32.mrb[6].mxu0 }
  0xec   :  { %638 = vmatmul.mubr.msk.bf16.vlgmr.msra.gmra.mrb[4].mxu1 %vm69_vm1, %v114_v28  ;;  %v256_v35 = vpack.c.bf16 %v250_v31, %v250_v31  ;;  %v253_v36 = vadd.f32 %v582_v27, %v252_v33  ;;  %v634_v37 = vpop.f32.mrb[7].mxu0 }
  0xed   :  { %649 = vmatprep.mubr.msk.bf16.mxu1 %vm710_vm0, %v709_v2 }
  0xee   :  { %644 = vmatmul.mubr.msk.bf16.vlgmr.msra.gmra.mrb[8].mxu0 %vm69_vm1, %v115_v34  ;;  %v376_v38 = vsel %vm374_vm2, %v256_v35, 0  ;;  %v257_v39 = vpack.c.bf16 %v253_v36, %v253_v36 }
  0xef   :  { %648 = vmatpush3.bf16.msra.mxu1 %v376_v38  ;;  %655 = vmatprep.mubr.msk.bf16.mxu0 %vm710_vm0, %v709_v2 }
  0xf0   :  { %v422_v40 = vsel %vm374_vm2, %v257_v39, 0  ;;  %659 = vmatprep.subr.mxu1 %v709_v2 }
  0xf1   :  { %654 = vmatpush3.bf16.msra.mxu0 %v422_v40 }
 0x1bf   :  { %v298_v41 = vpop.f32.mrb[4].mxu1 }
 0x1c0   :  { %v639_v42 = vpop.f32.mrb[5].mxu1  ;;  %v351_v43 = vsel %vm350_vm3, %v298_v41, -inf }
 0x1c1   :  { %352 = vmax.xlane.f32.xlu0 %v351_v43  ;;  %v301_v44 = vpop.f32.mrb[6].mxu1  ;;  %v344_v45 = vpop.f32.mrb[8].mxu0 }
 0x1c2   :  { %v640_v46 = vpop.f32.mrb[7].mxu1  ;;  %v645_v47 = vpop.f32.mrb[9].mxu0  ;;  %v354_v50 = vsel %vm350_vm3, %v344_v45, -inf }
 0x1c3   :  { %v347_v48 = vpop.f32.mrb[10].mxu0 }
 0x1c4   :  { %v646_v49 = vpop.f32.mrb[11].mxu0 }
 0x1c5   :  { %355 = vmax.xlane.f32.xlu0 %v354_v50 }
 0x1db   :  { %473 = vperm.xlu0 %668, %v470_v63  }
 0x24e   :  { %v353_v51 = vpop.xlane.xlu0 %352 }
 0x24f   :  { %v357_v52 = vsub.f32 %v298_v41, %v353_v51 }
 0x251   :  { %v359_v53 = vmul.f32 1.442695, %v357_v52 }
 0x252   :  { %v356_v54 = vpop.xlane.xlu0 %355 }
 0x253   :  { %677 = vpow2.f32 %v359_v53  ;;  %v358_v55 = vsub.f32 %v344_v45, %v356_v54 }
 0x255   :  { %v361_v56 = vmul.f32 1.442695, %v358_v55 }
 0x257   :  { %679 = vpow2.f32 %v361_v56 }
 0x25a   :  { %v474_v20 = vpop.permute.xlu0 %473 }
 0x25b   :  { %v479_v21 = vrot.slane %v474_v20, %v478_v19 }
 0x25d   :  { %v678_v57 = vpop.eup %677 }
 0x25e   :  { %v363_v58 = vsel %vm350_vm3, %v678_v57, 0.0  ;;  %v369_v59 = vpack.c.bf16 %v678_v57, %v678_v57 }
 0x25f   :  { %364 = vadd.xlane.f32.xlu1 %v363_v58 }
 0x260   :  { %650 = vmatmul.mubr.msk.bf16.vlgmr.msra.gmra.mrb[8].mxu1 %vm350_vm3, %v369_v59 }
 0x261   :  { %v680_v60 = vpop.eup %679  ;;  %661 = vmatprep.mubr.msk.f32.mxu1 %vm710_vm0, %v709_v2 }
 0x262   :  { %v366_v61 = vsel %vm350_vm3, %v680_v60, 0.0  ;;  %v370_v62 = vpack.c.bf16 %v680_v60, %v680_v60 }
 0x263   :  { %367 = vadd.xlane.f32.xlu1 %v366_v61 }
 0x264   :  { %656 = vmatmul.mubr.msk.bf16.vlgmr.msra.gmra.mrb[12].mxu0 %vm350_vm3, %v370_v62 }
 0x2ec   :  { %v365_v1 = vpop.xlane.xlu1 %364 }
 0x2ed   :  { %681 = vrcp.f32 %v365_v1 }
 0x2f0   :  { %v368_v3 = vpop.xlane.xlu1 %367 }
 0x2f1   :  { %683 = vrcp.f32 %v368_v3 }
 0x2f7   :  { %v682_v7 = vpop.eup %681 }
 0x2fb   :  { %v684_v2 = vpop.eup %683 }
 0x333   :  { %v412_v4 = vpop.f32.mrb[8].mxu1 }
 0x334   :  { %v651_v5 = vpop.f32.mrb[9].mxu1  ;;  %v466_v10 = vmul.f32 %v682_v7, %v412_v4 }
 0x335   :  { %v415_v6 = vpop.f32.mrb[10].mxu1 }
 0x336   :  { %v652_v8 = vpop.f32.mrb[11].mxu1 }
 0x337   :  { %v458_v9 = vpop.f32.mrb[12].mxu0 }
 0x338   :  { %v467_v11 = vmul.f32 %v684_v2, %v458_v9  ;;  %v657_v12 = vpop.f32.mrb[13].mxu0 }
 0x339   :  { %v461_v13 = vpop.f32.mrb[14].mxu0 }
 0x33a   :  { %v468_v14 = vadd.f32 %v467_v11, %v466_v10  ;;  %v658_v15 = vpop.f32.mrb[15].mxu0 }
 0x33c   :  { %660 = vmatpush3.xpose.msk.msra.mxu1 %vm69_vm1, %v468_v14 }
 0x33f   :  { %662 = vmatmul.mubr.msk.f32.vlgmr.msra.gmra.mrb[12].mxu1 %vm69_vm1, %v469_v16 }
 0x412   :  { %v552_v22 = vpop.f32.mrb[12].mxu1 }
 0x413   :  { %v553_v23 = vadd.f32 %v552_v22, %v479_v21  ;;  %v663_v24 = vpop.f32.mrb[13].mxu1 }
 0x415   :  { %557 = vst.msk [vmem:[#allocation3] sm:$0x1] %vm556_vm4, %v553_v23 }
 0x416   :  { %696 = shalt.err (!%p693_p4)
}
 0x417   :  { %s697_s15 = scalar_lea.hbm %s871_s10, 16 }
 0x418   :  { %p698_p5 = scmp.ne.s32.totalorder %s871_s10, %s697_s15  ;;  %p701_p6 = scmp.lt.u32.totalorder %s697_s15, %s871_s10 }
 0x41a   :  { %p703_p7 = pnand %p701_p6, %p698_p5 }
 0x41c   :  { %706 = shalt.err (!%p703_p7)
}
 0x41d   :  { %567 = dma.vmem_to_hbm [thread:$0]  %s565_s11, 16, %s871_s10, [#allocation4]  }
 0x41e   :  { %707 = dma.done.wait [#allocation4], 16  }
 0x41f   :  { %708 = vsyncadd [#allocation4], 4294967280 }
 0x420   :  { %571 = vsyncpa [#allocation4], 1 }

</bundles_post_ra>
